<compile_context>
chip_gen: v7x
topology: tpu7x:2x2x1
jax: 0.10.0
libtpu: 0.0.40
codegen_flags: <defaults>
</compile_context>

<pallas_src>
import functools

import jax
import jax.numpy as jnp
from jax import lax
from jax.experimental import pallas as pl
from jax.experimental.pallas import tpu as pltpu


def _round_up(x, m):
    return ((x + m - 1) // m) * m


def _pick_batch_block(B, VT, max_lanes=4096):
    """Batch elements folded into the lane dim per grid step.

    Priorities: (1) keep >= 2 grid steps whenever B >= 2 (both v7x TensorCores busy),
    (2) aim for >= 256 output lanes of matmul work per step, (3) cap the lane width so
    the patch block stays small in VMEM.
    """
    if B <= 1:
        return 1
    cands = [d for d in range(1, B // 2 + 1) if B % d == 0 and d * VT <= max_lanes]
    if not cands:
        return 1
    for d in cands:                      # smallest divisor reaching 256 lanes/step
        if d * VT >= 256:
            return d
    return cands[-1]                     # otherwise the widest allowed


def _tcn_matmul_kernel(p_ref, w_ref, b_ref, o_ref):
    # p_ref: (1, KK_pad, N_blk)  bf16  lane-dense im2col patch for this batch block
    # w_ref: (C_out, KK_pad)     bf16  conv weights, shortcut folded, zero-padded cols
    # b_ref: (C_out, 1)          f32   conv bias + shortcut bias
    # o_ref: (1, C_out, N_blk)         output block (full-width lane-dense store)
    acc = jnp.dot(w_ref[...], p_ref[0], preferred_element_type=jnp.float32)
    o_ref[0] = (acc + b_ref[...]).astype(o_ref.dtype)


def tcn_block_forward(x_nchw, conv_w, conv_b, sc_w, sc_b, kernel_size, dilation,
                      out_dtype=None):
    """x_nchw: (B, C_in, V, T). conv_w: (C_out, C_in, 3, K). Returns (B, C_out, V, T)."""
    B, C_in, V, T = x_nchw.shape
    C_out = conv_w.shape[0]
    K = kernel_size
    d = dilation
    pad = (K - 1) * d
    VT = V * T
    KK = 3 * K * C_in
    KK_pad = _round_up(KK, 128)
    out_dtype = x_nchw.dtype if out_dtype is None else out_dtype

    # --- weights: (C_out, C_in, 3, K) -> rows ordered (kh, kw, c); fold the shortcut
    #     into tap (kh=1, kw=K-1), which reads exactly x; zero-pad columns to KK_pad.
    w_t = jnp.transpose(conv_w, (0, 2, 3, 1))                    # (C_out, 3, K, C_in)
    if sc_w is None:
        assert C_in == C_out, "identity shortcut requires c_in == c_out"
        wsc = jnp.eye(C_out, dtype=conv_w.dtype)
        bsc = jnp.zeros((C_out,), conv_w.dtype)
    else:
        wsc = sc_w.reshape(C_out, C_in)
        bsc = sc_b
    # TODO(synk): for deep stacks where bf16-quantized residuals matter, add the
    #             identity skip in f32 outside the matmul instead of folding it here.
    w_t = w_t.at[:, 1, K - 1, :].add(wsc)
    w_flat = w_t.reshape(C_out, KK)
    w_flat = jnp.pad(w_flat, ((0, 0), (0, KK_pad - KK))).astype(jnp.bfloat16)
    b_tot = (conv_b + bsc).reshape(C_out, 1).astype(jnp.float32)

    # --- wrapper-side im2col: lane-dense patch (B, KK_pad, V*T); row order (kh, kw, c),
    #     lane order (v, t).  Zero rows KK..KK_pad keep the contraction exact.
    x_p = jnp.pad(x_nchw, ((0, 0), (0, 0), (1, 1), (pad, 0)))    # (B, C, V+2, T+pad)
    taps = [
        x_p[:, :, kh:kh + V, kw * d:kw * d + T].reshape(B, C_in, VT)
        for kh in range(3) for kw in range(K)
    ]
    patch = jnp.concatenate(taps, axis=1)                        # (B, KK, VT)
    patch = jnp.pad(patch, ((0, 0), (0, KK_pad - KK), (0, 0))).astype(jnp.bfloat16)

    # --- fold the batch block into the lane dim: (n_blk, KK_pad, bblk*VT). ---
    bblk = _pick_batch_block(B, VT)
    n_blk = B // bblk
    N_blk = bblk * VT
    patch = patch.reshape(n_blk, bblk, KK_pad, VT)
    patch = jnp.transpose(patch, (0, 2, 1, 3)).reshape(n_blk, KK_pad, N_blk)  # free when bblk == 1

    out = pl.pallas_call(
        _tcn_matmul_kernel,
        out_shape=jax.ShapeDtypeStruct((n_blk, C_out, N_blk), out_dtype),
        grid_spec=pltpu.PrefetchScalarGridSpec(
            num_scalar_prefetch=0,
            grid=(n_blk,),
            in_specs=[
                pl.BlockSpec((1, KK_pad, N_blk), lambda i: (i, 0, 0)),
                pl.BlockSpec((C_out, KK_pad), lambda i: (0, 0)),
                pl.BlockSpec((C_out, 1), lambda i: (0, 0)),
            ],
            out_specs=pl.BlockSpec((1, C_out, N_blk), lambda i: (i, 0, 0)),
        ),
        compiler_params=pltpu.CompilerParams(dimension_semantics=("parallel",)),
    )(patch, w_flat, b_tot)

    out = out.reshape(n_blk, C_out, bblk, V, T)
    out = jnp.transpose(out, (0, 2, 1, 3, 4))                    # no-op when bblk == 1
    return out.reshape(B, C_out, V, T)


def _reference(x, conv_w, conv_b, sc_w, sc_b, K, d):
    """Pure-JAX f32 reference matching the PyTorch forward (HIGHEST precision)."""
    T = x.shape[3]
    out = lax.conv_general_dilated(
        x, conv_w, window_strides=(1, 1),
        padding=((1, 1), ((K - 1) * d, (K - 1) * d)), rhs_dilation=(1, d),
        dimension_numbers=("NCHW", "OIHW", "NCHW"),
        precision=lax.Precision.HIGHEST,
    ) + conv_b[None, :, None, None]
    out = out[:, :, :, :T]                                       # Chomp
    if sc_w is not None:
        skip = lax.conv_general_dilated(
            x, sc_w, (1, 1), "VALID",
            dimension_numbers=("NCHW", "OIHW", "NCHW"),
            precision=lax.Precision.HIGHEST,
        ) + sc_b[None, :, None, None]
    else:
        skip = x
    return out + skip


if __name__ == "__main__":
    B, c_in, c_out = 2, 8, 16
    V, T = 8, 16                      # V*T = 128 -> lane-dense tiles
    kernel_size, dilation = 3, 2

    key = jax.random.PRNGKey(0)
    k1, k2, k3, k4, k5, k6 = jax.random.split(key, 6)
    conv_w = 0.1 * jax.random.normal(k1, (c_out, c_in, 3, kernel_size), jnp.float32)
    conv_b = 0.1 * jax.random.normal(k2, (c_out,), jnp.float32)
    sc_w = 0.1 * jax.random.normal(k3, (c_out, c_in, 1, 1), jnp.float32)   # c_in != c_out
    sc_b = 0.1 * jax.random.normal(k4, (c_out,), jnp.float32)
    x = jax.random.normal(k5, (B, c_in, V, T), jnp.float32)

    fwd = jax.jit(functools.partial(
        tcn_block_forward, kernel_size=kernel_size, dilation=dilation))

    # Case 1: projected shortcut (c_in != c_out).
    y = fwd(x, conv_w, conv_b, sc_w, sc_b)
    jax.block_until_ready(y)
    y_ref = _reference(x, conv_w, conv_b, sc_w, sc_b, kernel_size, dilation)
    assert y.shape == (B, c_out, V, T)
    err = float(jnp.max(jnp.abs(y - y_ref)))
    assert jnp.allclose(y, y_ref, rtol=5e-2, atol=5e-2), err   # bf16 MXU vs f32 HIGHEST ref

    # Case 2: identity shortcut (c_in == c_out, shortcut is None).
    conv_w2 = 0.1 * jax.random.normal(k6, (c_in, c_in, 3, kernel_size), jnp.float32)
    y2 = fwd(x, conv_w2, conv_b[:c_in], None, None)
    jax.block_until_ready(y2)
    y2_ref = _reference(x, conv_w2, conv_b[:c_in], None, None, kernel_size, dilation)
    assert y2.shape == (B, c_in, V, T)
    err2 = float(jnp.max(jnp.abs(y2 - y2_ref)))
    assert jnp.allclose(y2, y2_ref, rtol=5e-2, atol=5e-2), err2

    print("KERNEL_OK")
</pallas_src>

<mosaic_0001>
module attributes {stable_mosaic.version = 11 : i64} {
  func.func @_tcn_matmul_kernel(%arg0: i32, %arg1: memref<1x128x128xbf16, #tpu.memory_space<vmem>>, %arg2: memref<16x128xbf16, #tpu.memory_space<vmem>>, %arg3: memref<16x1xf32, #tpu.memory_space<vmem>>, %arg4: memref<1x16x128xf32, #tpu.memory_space<vmem>>) attributes {dimension_semantics = [#tpu.dimension_semantics<parallel>], iteration_bounds = array<i64: 2>, scalar_prefetch = 0 : i64, scratch_operands = 0 : i64, tpu.core_type = #tpu.core_type<tc>, window_params = [{transform_indices = @transform_0, window_bounds = array<i64: 1, 128, 128>}, {pipeline_mode = #tpu.pipeline_mode<synchronous>, transform_indices = @transform_1, window_bounds = array<i64: 16, 128>}, {pipeline_mode = #tpu.pipeline_mode<synchronous>, transform_indices = @transform_2, window_bounds = array<i64: 16, 1>}, {transform_indices = @transform_3, window_bounds = array<i64: 1, 16, 128>}]} {
    %c0 = arith.constant 0 : index
    %c0_0 = arith.constant 0 : index
    %0 = vector.load %arg2[%c0, %c0_0] : memref<16x128xbf16, #tpu.memory_space<vmem>>, vector<16x128xbf16>
    %c0_1 = arith.constant 0 : index
    %c0_2 = arith.constant 0 : index
    %c0_3 = arith.constant 0 : index
    %1 = vector.load %arg1[%c0_1, %c0_2, %c0_3] : memref<1x128x128xbf16, #tpu.memory_space<vmem>>, vector<1x128x128xbf16>
    %2 = vector.shape_cast %1 : vector<1x128x128xbf16> to vector<128x128xbf16>
    %cst = arith.constant dense<0.000000e+00> : vector<16x128xf32>
    %3 = tpu.matmul %0, %2, %cst {dimension_numbers = #tpu.dot_dimension_numbers<[1], [0], [0], [1], [0, 0, 1, 1], [], []>} : vector<16x128xbf16>, vector<128x128xbf16>, vector<16x128xf32> -> vector<16x128xf32>
    %c0_4 = arith.constant 0 : index
    %c0_5 = arith.constant 0 : index
    %4 = vector.load %arg3[%c0_4, %c0_5] : memref<16x1xf32, #tpu.memory_space<vmem>>, vector<16x1xf32>
    %5 = vector.broadcast %4 : vector<16x1xf32> to vector<16x128xf32>
    %6 = arith.addf %3, %5 : vector<16x128xf32>
    %c0_6 = arith.constant 0 : index
    %c0_7 = arith.constant 0 : index
    %c0_8 = arith.constant 0 : index
    %7 = vector.load %arg4[%c0_6, %c0_7, %c0_8] : memref<1x16x128xf32, #tpu.memory_space<vmem>>, vector<1x16x128xf32>
    %8 = vector.shape_cast %7 : vector<1x16x128xf32> to vector<16x128xf32>
    %9 = vector.shape_cast %6 : vector<16x128xf32> to vector<1x16x128xf32>
    tpu.vector_store %arg4[%c0_6, %c0_7, %c0_8], %9 {strides = array<i32>} : memref<1x16x128xf32, #tpu.memory_space<vmem>>, vector<1x16x128xf32>,
    return
  }
  func.func @transform_0(%arg0: i32) -> (i32, i32, i32) {
    %c0_i32 = arith.constant 0 : i32
    %c0_i32_0 = arith.constant 0 : i32
    %c0_i32_1 = arith.constant 0 : i32
    return %arg0, %c0_i32, %c0_i32_0 : i32, i32, i32
  }
  func.func @transform_1(%arg0: i32) -> (i32, i32) {
    %c0_i32 = arith.constant 0 : i32
    %c0_i32_0 = arith.constant 0 : i32
    %c0_i32_1 = arith.constant 0 : i32
    return %c0_i32, %c0_i32_0 : i32, i32
  }
  func.func @transform_2(%arg0: i32) -> (i32, i32) {
    %c0_i32 = arith.constant 0 : i32
    %c0_i32_0 = arith.constant 0 : i32
    %c0_i32_1 = arith.constant 0 : i32
    return %c0_i32, %c0_i32_0 : i32, i32
  }
  func.func @transform_3(%arg0: i32) -> (i32, i32, i32) {
    %c0_i32 = arith.constant 0 : i32
    %c0_i32_0 = arith.constant 0 : i32
    %c0_i32_1 = arith.constant 0 : i32
    return %arg0, %c0_i32, %c0_i32_0 : i32, i32, i32
  }
}

</mosaic_0001>

<bundles_post_ra>
// kernel: tcn_block_forward.1
= control target key start
LH: loop header
LB: loop body
LE: loop exit
PB: predicated region body
PF: predicated region fallthrough
CT: control target
= control target key end

     0   :  { %s457_s12 = smov 0   ;;  %s487_s0 = inlined_call_operand.vmem [shape: bf16[2,128,128], index: 0, kind: input, shape index: {}]   ;;  %s488_s1 = inlined_call_operand.vmem [shape: bf16[16,128], index: 1, kind: input, shape index: {}]   ;;  %s489_s2 = inlined_call_operand.vmem [shape: f32[16,1], index: 2, kind: input, shape index: {}]   ;;  %s490_s3 = inlined_call_operand.vmem [shape: f32[2,16,128], index: 3, kind: output, shape index: {}]  }
   0x1 LB: > { %s354_s13 = sadd.s32 4294967295, %s432_s12   ;;  %p358_p0 = scmp.ge.s32.totalorder %s432_s12, 1  ;;  %s432_s12 = sphi %s457_s12, %s13_s12  }
   0x2   : > { %p137_p1 = scmp.lt.s32.totalorder %s432_s12, 3 }
   0x4   : > { %p138_p2 = pnand %p358_p0, %p137_p1 }
   0x5   : > { %p161_p3 = scmp.lt.s32.totalorder (!%p138_p2), %s354_s13, 1  ;;  %v434_v0 = vmov (!%p138_p2), 0.0   ;;  %vm435_vm0 = vmmov (!%p138_p2), 0   ;;  %v190_v1 = vld [vmem:[%s489_s2] sm:$0xff] (!%p138_p2)  ;;  %v436_v2 = vmov (!%p138_p2), 0   ;;  %v191_v3 = vld [vmem:[%s489_s2 + $0x8] sm:$0xff] (!%p138_p2) }
   0x6   : > { %141 = sbr.rel (%p138_p2) target bundleno = 265 (0x109), region = 32  ;;  %385 = vmatprep.subr.bf16.mxu0 (!%p138_p2), %v434_v0  ;;  %401 = vmatprep.mubr.msk.bf16.mxu0 (!%p138_p2), %vm435_vm0, %v434_v0  ;;  %v425_v12 = vld [vmem:[%s488_s1] sm:$0xff] (!%p138_p2)  }
   0x7   : > { %416 = vset.pattern.permute.xlu0 (!%p138_p2), %v436_v2 }
   0x8   : > { %194 = vperm.xlu0 (!%p138_p2), %416, %v190_v1  }
   0xc   : > { %199 = vperm.xlu0 (!%p138_p2), %416, %v191_v3  }
   0xd   : > { %s492_s13 = smov (!%p161_p3, %s354_s13), 1 }
   0xe   : > { %s374_s16 = sshll.u32 %s492_s13, 6  ;;  %s375_s24 = sshll.u32 %s492_s13, 4 }
   0xf   : > { %s165_s21 = scalar_lea.vmem %s487_s0, %s374_s16  ;;  %s170_s27 = scalar_lea.vmem %s490_s3, %s375_s24 }
  0x10   : > { %v417_v4 = vld [vmem:[%s165_s21] sm:$0xff]   ;;  %v418_v5 = vld [vmem:[%s165_s21 + $0x8] sm:$0xff]   ;;  %v419_v6 = vld [vmem:[%s165_s21 + $0x10] sm:$0xff]  }
  0x11   : > { %386 = vmatpush3.bf16.msra.mxu0 %v417_v4  ;;  %v420_v7 = vld [vmem:[%s165_s21 + $0x18] sm:$0xff]   ;;  %v421_v8 = vld [vmem:[%s165_s21 + $0x20] sm:$0xff]   ;;  %v422_v9 = vld [vmem:[%s165_s21 + $0x28] sm:$0xff]  }
  0x12   : > { %387 = vmatprep.subr.bf16.mxu0 %v434_v0  ;;  %v423_v10 = vld [vmem:[%s165_s21 + $0x30] sm:$0xff]   ;;  %v424_v11 = vld [vmem:[%s165_s21 + $0x38] sm:$0xff]  }
  0x15   : > { %388 = vmatpush3.bf16.msra.mxu0 %v418_v5 }
  0x16   : > { %389 = vmatprep.subr.bf16.mxu0 %v434_v0 }
  0x19   : > { %390 = vmatpush3.bf16.msra.mxu0 %v419_v6 }
  0x1a   : > { %391 = vmatprep.subr.bf16.mxu0 %v434_v0 }
  0x1d   : > { %392 = vmatpush3.bf16.msra.mxu0 %v420_v7 }
  0x1e   : > { %393 = vmatprep.subr.bf16.mxu0 %v434_v0 }
  0x21   : > { %394 = vmatpush3.bf16.msra.mxu0 %v421_v8 }
  0x22   : > { %395 = vmatprep.subr.bf16.mxu0 %v434_v0 }
  0x25   : > { %396 = vmatpush3.bf16.msra.mxu0 %v422_v9 }
  0x26   : > { %397 = vmatprep.subr.bf16.mxu0 %v434_v0 }
  0x29   : > { %398 = vmatpush3.bf16.msra.mxu0 %v423_v10 }
  0x2a   : > { %399 = vmatprep.subr.bf16.mxu0 %v434_v0 }
  0x2d   : > { %400 = vmatpush3.bf16.msra.mxu0 %v424_v11 }
  0x30   : > { %402 = vmatmul.mubr.bf16.vlgmr.msra.gmra.mrb[0].mxu0 %v425_v12 }
  0x87   : > { %v195_v13 = vpop.permute.xlu0 %194 }
  0x8b   : > { %v200_v17 = vpop.permute.xlu0 %199 }
 0x103   : > { %v290_v14 = vpop.f32.mrb[0].mxu0 }
 0x104   : > { %v291_v15 = vadd.f32 %v290_v14, %v195_v13  ;;  %v403_v16 = vpop.f32.mrb[1].mxu0 }
 0x105   : > { %v293_v18 = vpop.f32.mrb[2].mxu0 }
 0x106   : > { %297 = vst [vmem:[%s170_s27] sm:$0xff] %v291_v15  ;;  %v294_v19 = vadd.f32 %v293_v18, %v200_v17  ;;  %v404_v20 = vpop.f32.mrb[3].mxu0 }
 0x108   : > { %298 = vst [vmem:[%s170_s27 + $0x8] sm:$0xff] %v294_v19 }
 0x109 PF: > { %s13_s12 = sadd.s32 1, %s432_s12  }
 0x10a   : > { %p10_p4 = scmp.ge.s32.totalorder %s13_s12, 4  }
 0x10c   :  { %12 = sbr.rel (!%p10_p4) target bundleno = 1 (0x1), region = 62 }

</bundles_post_ra>
